<compile_context>
chip_gen: v6e
topology: v6e:2x2x1
jax: 0.10.0
libtpu: 0.0.40
codegen_flags: <defaults>
</compile_context>

<pallas_src>
import jax
import jax.numpy as jnp
from jax.experimental import pallas as pl
from jax.experimental.pallas import tpu as pltpu


def _mha_kernel(q_ref, k_ref, v_ref, mask_ref,
                wq_ref, bq_ref, wk_ref, bk_ref, wv_ref, bv_ref,
                wo_ref, bo_ref, o_ref, acc_ref):
    hd = pl.program_id(2)
    nh = pl.num_programs(2)

    @pl.when(hd == 0)
    def _():
        acc_ref[...] = jnp.zeros_like(acc_ref)

    xq = q_ref[0]          # (TQ, D)
    xk = k_ref[0]          # (Sk, D)
    xv = v_ref[0]          # (Sk, D)

    # Per-head projections: y = x @ W_h.T + b_h  (contract last dims, f32 acc)
    q_h = jnp.einsum("sd,kd->sk", xq, wq_ref[0],
                     preferred_element_type=jnp.float32) + bq_ref[0]
    k_h = jnp.einsum("sd,kd->sk", xk, wk_ref[0],
                     preferred_element_type=jnp.float32) + bk_ref[0]
    v_h = jnp.einsum("sd,kd->sk", xv, wv_ref[0],
                     preferred_element_type=jnp.float32) + bv_ref[0]

    d_k = q_h.shape[-1]
    scale = 1.0 / (d_k ** 0.5)

    # Scaled dot-product attention (f32 throughout).
    scores = jnp.einsum("qk,sk->qs", q_h, k_h,
                        preferred_element_type=jnp.float32) * scale
    scores = jnp.where(mask_ref[0] == 0.0, -1e9, scores)

    m = jnp.max(scores, axis=-1, keepdims=True)           # XLU reductions
    e = jnp.exp(scores - m)                                # EUP
    p = e / jnp.sum(e, axis=-1, keepdims=True)
    # TODO(synk): nn.Dropout(p=0.1) on p is identity at inference; training-mode
    # dropout (pltpu.prng_seed / stateful_bernoulli) is not implemented here.

    ctx = jnp.einsum("qs,sk->qk", p, v_h,
                     preferred_element_type=jnp.float32)   # (TQ, d_k)

    # This head's contribution to the output projection: ctx @ Wo_head.T
    acc_ref[...] += jnp.einsum("sk,dk->sd", ctx, wo_ref[0],
                               preferred_element_type=jnp.float32)

    @pl.when(hd == nh - 1)
    def _():
        o_ref[0] = (acc_ref[...] + bo_ref[...]).astype(o_ref.dtype)


def mha_forward(query, key, value,
                wq, bq, wk, bk, wv, bv, wo, bo,
                *, h, mask=None, tile_q=None, compute_dtype=None):
    """query/key/value: (B, S, d_model); W*: (d_model, d_model) PyTorch layout
    (y = x @ W.T + b); b*: (d_model,); mask broadcastable to (B, Sq, Sk)."""
    B, Sq, D = query.shape
    Sk = key.shape[1]
    assert D % h == 0
    d_k = D // h

    if compute_dtype is not None:
        cast = lambda a: a.astype(compute_dtype)
        query, key, value = cast(query), cast(key), cast(value)
        wq, wk, wv, wo = cast(wq), cast(wk), cast(wv), cast(wo)

    # Head-major weight layouts. Wq/Wk/Wv: pure reshapes (rows == output
    # features), no data movement. Wo: tiny repack (could be precomputed).
    wq_h = wq.reshape(h, d_k, D)
    wk_h = wk.reshape(h, d_k, D)
    wv_h = wv.reshape(h, d_k, D)
    wo_h = jnp.transpose(wo.reshape(D, h, d_k), (1, 0, 2))      # (h, D, d_k)
    bq_h = bq.reshape(h, 1, d_k).astype(jnp.float32)
    bk_h = bk.reshape(h, 1, d_k).astype(jnp.float32)
    bv_h = bv.reshape(h, 1, d_k).astype(jnp.float32)
    bo_2 = bo.reshape(1, D).astype(jnp.float32)

    if mask is None:
        mask_arr = jnp.ones((B, Sq, Sk), jnp.float32)
    else:
        mask_arr = jnp.broadcast_to(mask.astype(jnp.float32), (B, Sq, Sk))

    if tile_q is None:
        tile_q = Sq if Sq <= 128 else 128                       # fixed row tile
    grid = (B, pl.cdiv(Sq, tile_q), h)

    out = pl.pallas_call(
        _mha_kernel,
        out_shape=jax.ShapeDtypeStruct((B, Sq, D), query.dtype),
        grid_spec=pltpu.PrefetchScalarGridSpec(
            num_scalar_prefetch=0,
            grid=grid,
            in_specs=[
                pl.BlockSpec((1, tile_q, D), lambda b, qi, hd: (b, qi, 0)),  # q
                pl.BlockSpec((1, Sk, D),     lambda b, qi, hd: (b, 0, 0)),   # k
                pl.BlockSpec((1, Sk, D),     lambda b, qi, hd: (b, 0, 0)),   # v
                pl.BlockSpec((1, tile_q, Sk), lambda b, qi, hd: (b, qi, 0)), # mask
                pl.BlockSpec((1, d_k, D),    lambda b, qi, hd: (hd, 0, 0)),  # Wq head
                pl.BlockSpec((1, 1, d_k),    lambda b, qi, hd: (hd, 0, 0)),  # bq head
                pl.BlockSpec((1, d_k, D),    lambda b, qi, hd: (hd, 0, 0)),  # Wk head
                pl.BlockSpec((1, 1, d_k),    lambda b, qi, hd: (hd, 0, 0)),  # bk head
                pl.BlockSpec((1, d_k, D),    lambda b, qi, hd: (hd, 0, 0)),  # Wv head
                pl.BlockSpec((1, 1, d_k),    lambda b, qi, hd: (hd, 0, 0)),  # bv head
                pl.BlockSpec((1, D, d_k),    lambda b, qi, hd: (hd, 0, 0)),  # Wo head
                pl.BlockSpec((1, D),         lambda b, qi, hd: (0, 0)),      # bo
            ],
            out_specs=pl.BlockSpec((1, tile_q, D), lambda b, qi, hd: (b, qi, 0)),
            scratch_shapes=[pltpu.VMEM((tile_q, D), jnp.float32)],
        ),
        compiler_params=pltpu.CompilerParams(
            dimension_semantics=("parallel", "parallel", "arbitrary")),
    )(query, key, value, mask_arr,
      wq_h, bq_h, wk_h, bk_h, wv_h, bv_h, wo_h, bo_2)
    return out


def _reference(q, k, v, wq, bq, wk, bk, wv, bv, wo, bo, h, mask=None):
    B, S, D = q.shape
    d_k = D // h

    def proj(x, w, b):
        y = jnp.einsum("bsd,kd->bsk", x, w) + b
        return y.reshape(B, -1, h, d_k).transpose(0, 2, 1, 3)   # (B, h, S, d_k)

    qh, kh, vh = proj(q, wq, bq), proj(k, wk, bk), proj(v, wv, bv)
    scores = jnp.einsum("bhqd,bhkd->bhqk", qh, kh) / (d_k ** 0.5)
    if mask is not None:
        m = jnp.broadcast_to(mask, (B, scores.shape[-2], scores.shape[-1]))
        scores = jnp.where(m[:, None, :, :] == 0, -1e9, scores)
    p = jax.nn.softmax(scores, axis=-1)
    ctx = jnp.einsum("bhqk,bhkd->bhqd", p, vh)
    ctx = ctx.transpose(0, 2, 1, 3).reshape(B, -1, D)
    return jnp.einsum("bsd,kd->bsk", ctx, wo) + bo


if __name__ == "__main__":
    key = jax.random.PRNGKey(0)
    batch, seq, d_model, h = 2, 8, 32, 4

    ks = jax.random.split(key, 12)
    bound = 1.0 / (d_model ** 0.5)

    def lin(kw, kb):
        w = jax.random.uniform(kw, (d_model, d_model), jnp.float32, -bound, bound)
        b = jax.random.uniform(kb, (d_model,), jnp.float32, -bound, bound)
        return w, b

    wq, bq = lin(ks[0], ks[1])
    wk, bk = lin(ks[2], ks[3])
    wv, bv = lin(ks[4], ks[5])
    wo, bo = lin(ks[6], ks[7])

    q = jax.random.normal(ks[8], (batch, seq, d_model), jnp.float32)
    k = jax.random.normal(ks[9], (batch, seq, d_model), jnp.float32)
    v = jax.random.normal(ks[10], (batch, seq, d_model), jnp.float32)

    # Causal ("subsequent") mask, broadcast over batch — exercises masked_fill.
    mask = jnp.tril(jnp.ones((1, seq, seq), jnp.float32))

    y = mha_forward(q, k, v, wq, bq, wk, bk, wv, bv, wo, bo, h=h, mask=mask)
    y = jax.block_until_ready(y)

    y_ref = _reference(q, k, v, wq, bq, wk, bk, wv, bv, wo, bo, h, mask=mask)
    assert y.shape == (batch, seq, d_model)
    assert jnp.allclose(y, y_ref, atol=1e-4, rtol=1e-4), \
        float(jnp.max(jnp.abs(y - y_ref)))

    print("KERNEL_OK")
</pallas_src>

<mosaic_0001>
module attributes {stable_mosaic.version = 11 : i64} {
  func.func @_mha_kernel(%arg0: i32, %arg1: i32, %arg2: i32, %arg3: memref<1x8x32xf32, #tpu.memory_space<vmem>>, %arg4: memref<1x8x32xf32, #tpu.memory_space<vmem>>, %arg5: memref<1x8x32xf32, #tpu.memory_space<vmem>>, %arg6: memref<1x8x8xf32, #tpu.memory_space<vmem>>, %arg7: memref<1x8x32xf32, #tpu.memory_space<vmem>>, %arg8: memref<1x1x8xf32, #tpu.memory_space<vmem>>, %arg9: memref<1x8x32xf32, #tpu.memory_space<vmem>>, %arg10: memref<1x1x8xf32, #tpu.memory_space<vmem>>, %arg11: memref<1x8x32xf32, #tpu.memory_space<vmem>>, %arg12: memref<1x1x8xf32, #tpu.memory_space<vmem>>, %arg13: memref<1x32x8xf32, #tpu.memory_space<vmem>>, %arg14: memref<1x32xf32, #tpu.memory_space<vmem>>, %arg15: memref<1x8x32xf32, #tpu.memory_space<vmem>>, %arg16: memref<8x32xf32, #tpu.memory_space<vmem>>) attributes {dimension_semantics = [#tpu.dimension_semantics<parallel>, #tpu.dimension_semantics<parallel>, #tpu.dimension_semantics<arbitrary>], iteration_bounds = array<i64: 2, 1, 4>, scalar_prefetch = 0 : i64, scratch_operands = 1 : i64, tpu.core_type = #tpu.core_type<tc>, window_params = [{transform_indices = @transform_0, window_bounds = array<i64: 1, 8, 32>}, {transform_indices = @transform_1, window_bounds = array<i64: 1, 8, 32>}, {transform_indices = @transform_2, window_bounds = array<i64: 1, 8, 32>}, {transform_indices = @transform_3, window_bounds = array<i64: 1, 8, 8>}, {transform_indices = @transform_4, window_bounds = array<i64: 1, 8, 32>}, {transform_indices = @transform_5, window_bounds = array<i64: 1, 1, 8>}, {transform_indices = @transform_6, window_bounds = array<i64: 1, 8, 32>}, {transform_indices = @transform_7, window_bounds = array<i64: 1, 1, 8>}, {transform_indices = @transform_8, window_bounds = array<i64: 1, 8, 32>}, {transform_indices = @transform_9, window_bounds = array<i64: 1, 1, 8>}, {transform_indices = @transform_10, window_bounds = array<i64: 1, 32, 8>}, {pipeline_mode = #tpu.pipeline_mode<synchronous>, transform_indices = @transform_11, window_bounds = array<i64: 1, 32>}, {transform_indices = @transform_12, window_bounds = array<i64: 1, 8, 32>}]} {
    %c0_i32 = arith.constant 0 : i32
    %0 = arith.cmpi eq, %arg2, %c0_i32 : i32
    %1 = arith.extui %0 : i1 to i32
    %c0_i32_0 = arith.constant 0 : i32
    %2 = arith.cmpi ne, %1, %c0_i32_0 : i32
    scf.if %2 {
      %cst_48 = arith.constant 0.000000e+00 : f32
      %58 = vector.broadcast %cst_48 : f32 to vector<8x32xf32>
      %c0_49 = arith.constant 0 : index
      %c0_50 = arith.constant 0 : index
      %59 = vector.load %arg16[%c0_49, %c0_50] : memref<8x32xf32, #tpu.memory_space<vmem>>, vector<8x32xf32>
      tpu.vector_store %arg16[%c0_49, %c0_50], %58 {strides = array<i32>} : memref<8x32xf32, #tpu.memory_space<vmem>>, vector<8x32xf32>,
    } else {
    }
    %c0 = arith.constant 0 : index
    %c0_1 = arith.constant 0 : index
    %c0_2 = arith.constant 0 : index
    %3 = vector.load %arg3[%c0, %c0_1, %c0_2] : memref<1x8x32xf32, #tpu.memory_space<vmem>>, vector<1x8x32xf32>
    %4 = vector.shape_cast %3 : vector<1x8x32xf32> to vector<8x32xf32>
    %c0_3 = arith.constant 0 : index
    %c0_4 = arith.constant 0 : index
    %c0_5 = arith.constant 0 : index
    %5 = vector.load %arg4[%c0_3, %c0_4, %c0_5] : memref<1x8x32xf32, #tpu.memory_space<vmem>>, vector<1x8x32xf32>
    %6 = vector.shape_cast %5 : vector<1x8x32xf32> to vector<8x32xf32>
    %c0_6 = arith.constant 0 : index
    %c0_7 = arith.constant 0 : index
    %c0_8 = arith.constant 0 : index
    %7 = vector.load %arg5[%c0_6, %c0_7, %c0_8] : memref<1x8x32xf32, #tpu.memory_space<vmem>>, vector<1x8x32xf32>
    %8 = vector.shape_cast %7 : vector<1x8x32xf32> to vector<8x32xf32>
    %c0_9 = arith.constant 0 : index
    %c0_10 = arith.constant 0 : index
    %c0_11 = arith.constant 0 : index
    %9 = vector.load %arg7[%c0_9, %c0_10, %c0_11] : memref<1x8x32xf32, #tpu.memory_space<vmem>>, vector<1x8x32xf32>
    %10 = vector.shape_cast %9 : vector<1x8x32xf32> to vector<8x32xf32>
    "tpu.trace_start"() <{level = 10 : i32, message = "sd,kd->sk"}> : () -> ()
    %cst = arith.constant dense<0.000000e+00> : vector<8x8xf32>
    %11 = tpu.matmul %4, %10, %cst {dimension_numbers = #tpu.dot_dimension_numbers<[1], [1], [0], [0], [0, 0, 1, 0], [], []>} : vector<8x32xf32>, vector<8x32xf32>, vector<8x8xf32> -> vector<8x8xf32>
    "tpu.trace_stop"() : () -> ()
    %c0_12 = arith.constant 0 : index
    %c0_13 = arith.constant 0 : index
    %c0_14 = arith.constant 0 : index
    %12 = vector.load %arg8[%c0_12, %c0_13, %c0_14] : memref<1x1x8xf32, #tpu.memory_space<vmem>>, vector<1x1x8xf32>
    %13 = vector.shape_cast %12 : vector<1x1x8xf32> to vector<1x8xf32>
    %14 = vector.broadcast %13 : vector<1x8xf32> to vector<8x8xf32>
    %15 = arith.addf %11, %14 : vector<8x8xf32>
    %c0_15 = arith.constant 0 : index
    %c0_16 = arith.constant 0 : index
    %c0_17 = arith.constant 0 : index
    %16 = vector.load %arg9[%c0_15, %c0_16, %c0_17] : memref<1x8x32xf32, #tpu.memory_space<vmem>>, vector<1x8x32xf32>
    %17 = vector.shape_cast %16 : vector<1x8x32xf32> to vector<8x32xf32>
    "tpu.trace_start"() <{level = 10 : i32, message = "sd,kd->sk"}> : () -> ()
    %cst_18 = arith.constant dense<0.000000e+00> : vector<8x8xf32>
    %18 = tpu.matmul %6, %17, %cst_18 {dimension_numbers = #tpu.dot_dimension_numbers<[1], [1], [0], [0], [0, 0, 1, 0], [], []>} : vector<8x32xf32>, vector<8x32xf32>, vector<8x8xf32> -> vector<8x8xf32>
    "tpu.trace_stop"() : () -> ()
    %c0_19 = arith.constant 0 : index
    %c0_20 = arith.constant 0 : index
    %c0_21 = arith.constant 0 : index
    %19 = vector.load %arg10[%c0_19, %c0_20, %c0_21] : memref<1x1x8xf32, #tpu.memory_space<vmem>>, vector<1x1x8xf32>
    %20 = vector.shape_cast %19 : vector<1x1x8xf32> to vector<1x8xf32>
    %21 = vector.broadcast %20 : vector<1x8xf32> to vector<8x8xf32>
    %22 = arith.addf %18, %21 : vector<8x8xf32>
    %c0_22 = arith.constant 0 : index
    %c0_23 = arith.constant 0 : index
    %c0_24 = arith.constant 0 : index
    %23 = vector.load %arg11[%c0_22, %c0_23, %c0_24] : memref<1x8x32xf32, #tpu.memory_space<vmem>>, vector<1x8x32xf32>
    %24 = vector.shape_cast %23 : vector<1x8x32xf32> to vector<8x32xf32>
    "tpu.trace_start"() <{level = 10 : i32, message = "sd,kd->sk"}> : () -> ()
    %cst_25 = arith.constant dense<0.000000e+00> : vector<8x8xf32>
    %25 = tpu.matmul %8, %24, %cst_25 {dimension_numbers = #tpu.dot_dimension_numbers<[1], [1], [0], [0], [0, 0, 1, 0], [], []>} : vector<8x32xf32>, vector<8x32xf32>, vector<8x8xf32> -> vector<8x8xf32>
    "tpu.trace_stop"() : () -> ()
    %c0_26 = arith.constant 0 : index
    %c0_27 = arith.constant 0 : index
    %c0_28 = arith.constant 0 : index
    %26 = vector.load %arg12[%c0_26, %c0_27, %c0_28] : memref<1x1x8xf32, #tpu.memory_space<vmem>>, vector<1x1x8xf32>
    %27 = vector.shape_cast %26 : vector<1x1x8xf32> to vector<1x8xf32>
    %28 = vector.broadcast %27 : vector<1x8xf32> to vector<8x8xf32>
    %29 = arith.addf %25, %28 : vector<8x8xf32>
    "tpu.trace_start"() <{level = 10 : i32, message = "qk,sk->qs"}> : () -> ()
    %cst_29 = arith.constant dense<0.000000e+00> : vector<8x8xf32>
    %30 = tpu.matmul %15, %22, %cst_29 {dimension_numbers = #tpu.dot_dimension_numbers<[1], [1], [0], [0], [0, 0, 1, 0], [], []>} : vector<8x8xf32>, vector<8x8xf32>, vector<8x8xf32> -> vector<8x8xf32>
    "tpu.trace_stop"() : () -> ()
    %cst_30 = arith.constant 0.353553385 : f32
    %31 = vector.broadcast %cst_30 : f32 to vector<8x8xf32>
    %32 = arith.mulf %30, %31 : vector<8x8xf32>
    %c0_31 = arith.constant 0 : index
    %c0_32 = arith.constant 0 : index
    %c0_33 = arith.constant 0 : index
    %33 = vector.load %arg6[%c0_31, %c0_32, %c0_33] : memref<1x8x8xf32, #tpu.memory_space<vmem>>, vector<1x8x8xf32>
    %34 = vector.shape_cast %33 : vector<1x8x8xf32> to vector<8x8xf32>
    %cst_34 = arith.constant 0.000000e+00 : f32
    %35 = vector.broadcast %cst_34 : f32 to vector<8x8xf32>
    %36 = arith.cmpf oeq, %34, %35 : vector<8x8xf32>
    %cst_35 = arith.constant -1.000000e+09 : f32
    %37 = vector.broadcast %cst_35 : f32 to vector<8x8xf32>
    %38 = arith.select %36, %37, %32 : vector<8x8xi1>, vector<8x8xf32>
    %cst_36 = arith.constant dense<0xFF800000> : vector<8xf32>
    %39 = vector.multi_reduction <maximumf>, %38, %cst_36 [1] : vector<8x8xf32> to vector<8xf32>
    %40 = vector.shape_cast %39 : vector<8xf32> to vector<8x1xf32>
    %41 = vector.broadcast %40 : vector<8x1xf32> to vector<8x8xf32>
    %42 = arith.subf %38, %41 : vector<8x8xf32>
    %43 = math.exp %42 : vector<8x8xf32>
    %cst_37 = arith.constant dense<0.000000e+00> : vector<8xf32>
    %44 = vector.multi_reduction <add>, %43, %cst_37 [1] : vector<8x8xf32> to vector<8xf32>
    %45 = vector.shape_cast %44 : vector<8xf32> to vector<8x1xf32>
    %46 = vector.broadcast %45 : vector<8x1xf32> to vector<8x8xf32>
    %47 = arith.divf %43, %46 : vector<8x8xf32>
    "tpu.trace_start"() <{level = 10 : i32, message = "qs,sk->qk"}> : () -> ()
    %cst_38 = arith.constant dense<0.000000e+00> : vector<8x8xf32>
    %48 = tpu.matmul %47, %29, %cst_38 {dimension_numbers = #tpu.dot_dimension_numbers<[1], [0], [0], [1], [0, 0, 1, 1], [], []>} : vector<8x8xf32>, vector<8x8xf32>, vector<8x8xf32> -> vector<8x8xf32>
    "tpu.trace_stop"() : () -> ()
    %c0_39 = arith.constant 0 : index
    %c0_40 = arith.constant 0 : index
    %49 = vector.load %arg16[%c0_39, %c0_40] : memref<8x32xf32, #tpu.memory_space<vmem>>, vector<8x32xf32>
    %c0_41 = arith.constant 0 : index
    %c0_42 = arith.constant 0 : index
    %c0_43 = arith.constant 0 : index
    %50 = vector.load %arg13[%c0_41, %c0_42, %c0_43] : memref<1x32x8xf32, #tpu.memory_space<vmem>>, vector<1x32x8xf32>
    %51 = vector.shape_cast %50 : vector<1x32x8xf32> to vector<32x8xf32>
    "tpu.trace_start"() <{level = 10 : i32, message = "sk,dk->sd"}> : () -> ()
    %cst_44 = arith.constant dense<0.000000e+00> : vector<8x32xf32>
    %52 = tpu.matmul %48, %51, %cst_44 {dimension_numbers = #tpu.dot_dimension_numbers<[1], [1], [0], [0], [0, 0, 1, 0], [], []>} : vector<8x8xf32>, vector<32x8xf32>, vector<8x32xf32> -> vector<8x32xf32>
    "tpu.trace_stop"() : () -> ()
    %53 = arith.addf %49, %52 : vector<8x32xf32>
    %c0_45 = arith.constant 0 : index
    %c0_46 = arith.constant 0 : index
    %54 = vector.load %arg16[%c0_45, %c0_46] : memref<8x32xf32, #tpu.memory_space<vmem>>, vector<8x32xf32>
    tpu.vector_store %arg16[%c0_45, %c0_46], %53 {strides = array<i32>} : memref<8x32xf32, #tpu.memory_space<vmem>>, vector<8x32xf32>,
    %c3_i32 = arith.constant 3 : i32
    %55 = arith.cmpi eq, %arg2, %c3_i32 : i32
    %56 = arith.extui %55 : i1 to i32
    %c0_i32_47 = arith.constant 0 : i32
    %57 = arith.cmpi ne, %56, %c0_i32_47 : i32
    scf.if %57 {
      %c0_48 = arith.constant 0 : index
      %c0_49 = arith.constant 0 : index
      %58 = vector.load %arg16[%c0_48, %c0_49] : memref<8x32xf32, #tpu.memory_space<vmem>>, vector<8x32xf32>
      %c0_50 = arith.constant 0 : index
      %c0_51 = arith.constant 0 : index
      %59 = vector.load %arg14[%c0_50, %c0_51] : memref<1x32xf32, #tpu.memory_space<vmem>>, vector<1x32xf32>
      %60 = vector.broadcast %59 : vector<1x32xf32> to vector<8x32xf32>
      %61 = arith.addf %58, %60 : vector<8x32xf32>
      %c0_52 = arith.constant 0 : index
      %c0_53 = arith.constant 0 : index
      %c0_54 = arith.constant 0 : index
      %62 = vector.load %arg15[%c0_52, %c0_53, %c0_54] : memref<1x8x32xf32, #tpu.memory_space<vmem>>, vector<1x8x32xf32>
      %63 = vector.shape_cast %62 : vector<1x8x32xf32> to vector<8x32xf32>
      %64 = vector.shape_cast %61 : vector<8x32xf32> to vector<1x8x32xf32>
      tpu.vector_store %arg15[%c0_52, %c0_53, %c0_54], %64 {strides = array<i32>} : memref<1x8x32xf32, #tpu.memory_space<vmem>>, vector<1x8x32xf32>,
    } else {
    }
    return
  }
  func.func @transform_0(%arg0: i32, %arg1: i32, %arg2: i32) -> (i32, i32, i32) {
    %c0_i32 = arith.constant 0 : i32
    %c0_i32_0 = arith.constant 0 : i32
    return %arg0, %arg1, %c0_i32 : i32, i32, i32
  }
  func.func @transform_1(%arg0: i32, %arg1: i32, %arg2: i32) -> (i32, i32, i32) {
    %c0_i32 = arith.constant 0 : i32
    %c0_i32_0 = arith.constant 0 : i32
    %c0_i32_1 = arith.constant 0 : i32
    return %arg0, %c0_i32, %c0_i32_0 : i32, i32, i32
  }
  func.func @transform_2(%arg0: i32, %arg1: i32, %arg2: i32) -> (i32, i32, i32) {
    %c0_i32 = arith.constant 0 : i32
    %c0_i32_0 = arith.constant 0 : i32
    %c0_i32_1 = arith.constant 0 : i32
    return %arg0, %c0_i32, %c0_i32_0 : i32, i32, i32
  }
  func.func @transform_3(%arg0: i32, %arg1: i32, %arg2: i32) -> (i32, i32, i32) {
    %c0_i32 = arith.constant 0 : i32
    %c0_i32_0 = arith.constant 0 : i32
    return %arg0, %arg1, %c0_i32 : i32, i32, i32
  }
  func.func @transform_4(%arg0: i32, %arg1: i32, %arg2: i32) -> (i32, i32, i32) {
    %c0_i32 = arith.constant 0 : i32
    %c0_i32_0 = arith.constant 0 : i32
    %c0_i32_1 = arith.constant 0 : i32
    return %arg2, %c0_i32, %c0_i32_0 : i32, i32, i32
  }
  func.func @transform_5(%arg0: i32, %arg1: i32, %arg2: i32) -> (i32, i32, i32) {
    %c0_i32 = arith.constant 0 : i32
    %c0_i32_0 = arith.constant 0 : i32
    %c0_i32_1 = arith.constant 0 : i32
    return %arg2, %c0_i32, %c0_i32_0 : i32, i32, i32
  }
  func.func @transform_6(%arg0: i32, %arg1: i32, %arg2: i32) -> (i32, i32, i32) {
    %c0_i32 = arith.constant 0 : i32
    %c0_i32_0 = arith.constant 0 : i32
    %c0_i32_1 = arith.constant 0 : i32
    return %arg2, %c0_i32, %c0_i32_0 : i32, i32, i32
  }
  func.func @transform_7(%arg0: i32, %arg1: i32, %arg2: i32) -> (i32, i32, i32) {
    %c0_i32 = arith.constant 0 : i32
    %c0_i32_0 = arith.constant 0 : i32
    %c0_i32_1 = arith.constant 0 : i32
    return %arg2, %c0_i32, %c0_i32_0 : i32, i32, i32
  }
  func.func @transform_8(%arg0: i32, %arg1: i32, %arg2: i32) -> (i32, i32, i32) {
    %c0_i32 = arith.constant 0 : i32
    %c0_i32_0 = arith.constant 0 : i32
    %c0_i32_1 = arith.constant 0 : i32
    return %arg2, %c0_i32, %c0_i32_0 : i32, i32, i32
  }
  func.func @transform_9(%arg0: i32, %arg1: i32, %arg2: i32) -> (i32, i32, i32) {
    %c0_i32 = arith.constant 0 : i32
    %c0_i32_0 = arith.constant 0 : i32
    %c0_i32_1 = arith.constant 0 : i32
    return %arg2, %c0_i32, %c0_i32_0 : i32, i32, i32
  }
  func.func @transform_10(%arg0: i32, %arg1: i32, %arg2: i32) -> (i32, i32, i32) {
    %c0_i32 = arith.constant 0 : i32
    %c0_i32_0 = arith.constant 0 : i32
    %c0_i32_1 = arith.constant 0 : i32
    return %arg2, %c0_i32, %c0_i32_0 : i32, i32, i32
  }
  func.func @transform_11(%arg0: i32, %arg1: i32, %arg2: i32) -> (i32, i32) {
    %c0_i32 = arith.constant 0 : i32
    %c0_i32_0 = arith.constant 0 : i32
    %c0_i32_1 = arith.constant 0 : i32
    return %c0_i32, %c0_i32_0 : i32, i32
  }
  func.func @transform_12(%arg0: i32, %arg1: i32, %arg2: i32) -> (i32, i32, i32) {
    %c0_i32 = arith.constant 0 : i32
    %c0_i32_0 = arith.constant 0 : i32
    return %arg0, %arg1, %c0_i32 : i32, i32, i32
  }
}

</mosaic_0001>

<bundles_post_ra>
// kernel: tpu_custom_call.1
= control target key start
LH: loop header
LB: loop body
LE: loop exit
PB: predicated region body
PF: predicated region fallthrough
CT: control target
= control target key end

     0   :  { %s1952_s0 = inlined_call_operand.vmem [shape: f32[2,8,32], index: 0, kind: input, shape index: {}]   ;;  %s1953_s1 = inlined_call_operand.vmem [shape: f32[2,8,32], index: 1, kind: input, shape index: {}]   ;;  %s1954_s2 = inlined_call_operand.vmem [shape: f32[2,8,32], index: 2, kind: input, shape index: {}]   ;;  %s1955_s3 = inlined_call_operand.vmem [shape: f32[2,8,8], index: 3, kind: input, shape index: {}]   ;;  %s1956_s4 = inlined_call_operand.vmem [shape: f32[4,8,32], index: 4, kind: input, shape index: {}]   ;;  %s1957_s5 = inlined_call_operand.vmem [shape: f32[4,1,8], index: 5, kind: input, shape index: {}]   ;;  %s1958_s6 = inlined_call_operand.vmem [shape: f32[4,8,32], index: 6, kind: input, shape index: {}]   ;;  %s1959_s7 = inlined_call_operand.vmem [shape: f32[4,1,8], index: 7, kind: input, shape index: {}]   ;;  %s1960_s8 = inlined_call_operand.vmem [shape: f32[4,8,32], index: 8, kind: input, shape index: {}]   ;;  %s1961_s9 = inlined_call_operand.vmem [shape: f32[4,1,8], index: 9, kind: input, shape index: {}]   ;;  %s1962_s10 = inlined_call_operand.vmem [shape: f32[4,32,8], index: 10, kind: input, shape index: {}]   ;;  %s1963_s11 = inlined_call_operand.vmem [shape: f32[1,32], index: 11, kind: input, shape index: {}]   ;;  %s1964_s12 = inlined_call_operand.hbm [shape: f32[2,8,32], index: 12, kind: output, shape index: {}]  }
   0x1   :  { %1979 = sst [smem:[#allocation18_spill]] %s1952_s0 }
   0x2   :  { %1980 = sst [smem:[#allocation19_spill]] %s1954_s2 }
   0x3   :  { %1981 = sst [smem:[#allocation20_spill]] %s1955_s3 }
   0x4   :  { %1982 = sst [smem:[#allocation21_spill]] %s1963_s11 }
   0x5   :  { %1983 = sst [smem:[#allocation22_spill]] %s1964_s12 }
   0x6   :  { %17 = vsyncpa [#allocation4], 0 }
   0x7   :  { %19 = vsyncpa [#allocation4 + $0x1], 0  ;;  %s1687_s21 = smov 0   ;;  %s1689_s22 = smov 0  }
   0x8   :  { %s1691_s23 = smov 0   ;;  %s1693_s24 = smov 0  }
   0x9   :  { %s1695_s25 = smov 0   ;;  %s1697_s26 = smov 0  }
   0xa   :  { %s1699_s27 = smov 0   ;;  %s1701_s28 = smov 0  }
   0xb LB: > { %1984 = sst [smem:[#allocation6_spill]] %s1588_s21  ;;  %s1355_s29 = sadd.s32 4294967295, %s1616_s28   ;;  %s1616_s28 = sphi %s1701_s28, %s25_s28   ;;  %s1612_s27 = sphi %s1699_s27, %s2023_s27   ;;  %s1608_s26 = sphi %s1697_s26, %s2022_s26   ;;  %s1604_s25 = sphi %s1695_s25, %s2021_s25   ;;  %s1600_s24 = sphi %s1693_s24, %s2020_s24   ;;  %s1596_s23 = sphi %s1691_s23, %s2019_s23   ;;  %s1592_s22 = sphi %s1689_s22, %s2018_s22   ;;  %s1588_s21 = sphi %s1687_s21, %s2017_s21  }
   0xc   : > { %1985 = sst [smem:[#allocation7_spill]] %s1592_s22  ;;  %s1356_s30 = sadd.s32 4294967294, %s1616_s28  }
   0xd   : > { %1986 = sst [smem:[#allocation8_spill]] %s1596_s23  ;;  %s37_s13 = sadd.s32 1, %s1608_s26 }
   0xe   : > { %1987 = sst [smem:[#allocation9_spill]] %s1604_s25  ;;  %p38_p0 = scmp.ge.s32.totalorder %s37_s13, 4 }
   0xf   : > { %1988 = sst [smem:[#allocation10_spill]] %s1608_s26  ;;  %s44_s14 = sadd.s32 1, %s1612_s27 }
  0x10   : > { %1989 = sst [smem:[#allocation11_spill]] %s1612_s27  ;;  %p374_p1 = scmp.ne.s32.totalorder %s1596_s23, %s1592_s22 }
  0x11   : > { %1990 = sst [smem:[#allocation12_spill]] %s1616_s28  ;;  %p375_p2 = scmp.eq.s32.totalorder %s1355_s29, 7 }
  0x12   : > { %s2025_s13 = smov (%p38_p0, %s37_s13), 0  ;;  %s2027_s14 = smov (!%p38_p0, %s44_s14), %s1612_s27 }
  0x13   : > { %1991 = sst [smem:[#allocation13_spill]] %s2025_s13  ;;  %p1736_p3 = por %p375_p2, %p374_p1 }
  0x14   : > { %p380_p4 = scmp.ne.s32.totalorder %s1592_s22, %s1588_s21  ;;  %p46_p5 = scmp.ge.s32.totalorder %s2027_s14, 2 }
  0x15   : > { %s1992_s15 = scalar_select %p1736_p3, 1, 0 }
  0x16   : > { %p381_p6 = scmp.eq.s32.totalorder %s1356_s30, 7  ;;  %p1359_p7 = scmp.ge.s32.totalorder %s1616_s28, 1 }
  0x17   : > { %1993 = sst [smem:[#allocation14_spill]] %s1992_s15  ;;  %p483_p8 = scmp.lt.s32.totalorder %s1616_s28, 9 }
  0x18   : > { %s2029_s14 = smov (%p46_p5, %s2027_s14), 0  ;;  %p1746_p9 = por %p381_p6, %p380_p4 }
  0x19   : > { %1994 = sst [smem:[#allocation15_spill]] %s2029_s14  ;;  %p484_p10 = pnand %p1359_p7, %p483_p8 }
  0x1a   : > { %s1995_s16 = scalar_select %p1746_p9, 1, 0 }
  0x1b   : > { %s359_s17 = ssub.s32 %s1612_s27, %s2029_s14  ;;  %s364_s18 = sadd.s32 1, %s1596_s23 }
  0x1c   : > { %1996 = sst [smem:[#allocation16_spill]] %s1995_s16  ;;  %p362_p11 = scmp.eq.s32.totalorder %s359_s17, 0 }
  0x1d   : > { %487 = sbr.rel (%p484_p10) target bundleno = 1187 (0x4a3), region = 68  ;;  %s1966_s20 = sand.u32 (!%p484_p10), 1, %s1592_s22  }
  0x1e   : > { %s1754_s19 = scalar_select %p362_p11, %s1596_s23, %s364_s18  }
  0x1f   : > { %p568_p12 = scmp.lt.s32.totalorder (!%p484_p10), %s1604_s25, 1  ;;  %s1760_s29 = sshll.u32 (!%p484_p10), %s1966_s20, 3 }
  0x20   : > { %1997 = sst [smem:[#allocation17_spill]] %s1754_s19  ;;  %p590_p13 = scmp.lt.s32.totalorder (!%p484_p10), %s1600_s24, 3 }
  0x21   : > { %s1998_s0 = sld [smem:[#allocation18_spill]] (!%p484_p10)  ;;  %s567_s19 = scalar_lea.vmem (!%p484_p10), [#allocation3], %s1760_s29 }
  0x22   : > { %s569_s30 = scalar_select %p568_p12, %s1604_s25, 1 }
  0x23   : > { %s1765_s14 = scalar_select %p590_p13, %s1600_s24, 3 }
  0x24   : > { %s1767_s17 = sshll.u32 %s569_s30, 3  ;;  %p1370_p0 = scmp.ne.s32.totalorder %s1600_s24, 0 }
  0x25   : > { %s1786_s15 = sshll.u32 %s1765_s14, 3  ;;  %s603_s28 = scalar_lea.vmem %s1959_s7, %s1765_s14 }
  0x26   : > { %s593_s27 = scalar_lea.vmem %s1956_s4, %s1786_s15  ;;  %s600_s16 = scalar_lea.vmem %s1958_s6, %s1786_s15 }
  0x27   : > { %s574_s20 = scalar_lea.vmem %s1998_s0, %s1767_s17  ;;  %s607_s22 = scalar_lea.vmem %s1960_s8, %s1786_s15 }
  0x28   : > { %s610_s18 = scalar_lea.vmem %s1961_s9, %s1765_s14  ;;  %s1394_s3 = sshll.u32 %s1765_s14, 5 }
  0x29   : > { %s1816_s26 = scalar_lea.vmem %s1962_s10, %s1394_s3  ;;  %619 = sbr.rel (%p1370_p0) target bundleno = 48 (0x30), region = 72 }
  0x2e   : > { %vm620_vm0 = vcmask 261120   ;;  %v1618_v0 = vmov 0.0  }
  0x2f   : > { %621 = vst.msk [vmem:[#allocation2] sm:$0xff] %vm620_vm0, %v1618_v0 }
  0x30 PF: > { %v625_v1 = vld [vmem:[%s593_s27] sm:$0xff]  ;;  %vm633_vm1 = vcmask 261120   ;;  %v1619_v2 = vmov 0.0   ;;  %vm1620_vm2 = vmmov 0   ;;  %s2001_s11 = scalar_lea.vmem %s1953_s1, %s1767_s17  ;;  %vm878_vm3 = vcmask 64512   ;;  %s2002_s27 = scalar_lea.vmem %s1957_s5, %s1765_s14  ;;  %v1047_v31 = vld [vmem:[%s1816_s26 + $0x18] sm:$0xff] }
  0x31   : > { %1410 = vmatprep.subr.mxu0 %v1619_v2  ;;  %1412 = vmatprep.mubr.msk.f32.mxu0 %vm1620_vm2, %v1619_v2  ;;  %v622_v3 = vld [vmem:[%s574_s20] sm:$0xff]  ;;  %s2003_s13 = sld [smem:[#allocation19_spill]]  ;;  %v1046_v32 = vld [vmem:[%s1816_s26 + $0x10] sm:$0xff]  ;;  %v1045_v33 = vld [vmem:[%s1816_s26 + $0x8] sm:$0xff]  ;;  %p1388_p1 = scmp.ne.s32.totalorder %s1600_s24, 3 }
  0x32   : > { %1411 = vmatpush3.xpose.msk.msra.mxu0 %vm633_vm1, %v625_v1  ;;  %1425 = vmatprep.subr.mxu1 %v1619_v2  ;;  %v710_v4 = vld [vmem:[%s600_s16] sm:$0xff] }
  0x33   : > { %1415 = vmatprep.subr.mxu0 %v1619_v2  ;;  %1427 = vmatprep.mubr.msk.f32.mxu1 %vm1620_vm2, %v1619_v2  ;;  %v623_v5 = vld [vmem:[%s2001_s11] sm:$0xff]  ;;  %s2005_s11 = sld [smem:[#allocation20_spill]] }
  0x34   : > { %v1374_v8 = vld [vmem:[%s603_s28] ss:$0 sm:$0xff] }
  0x35   : > { %1413 = vmatmul.mubr.msk.f32.vlgmr.msra.gmra.mxu0 %vm633_vm1, %v622_v3  ;;  %v1371_v10 = vld [vmem:[%s2002_s27] ss:$0 sm:$0xff] }
  0x36   : > { %1416 = vmatpush3.xpose.msk.msra.mxu0 %vm633_vm1, %v710_v4  ;;  %1417 = vmatprep.mubr.msk.f32.mxu0 %vm1620_vm2, %v1619_v2  ;;  %v794_v14 = vld [vmem:[%s607_s22] sm:$0xff]  ;;  %s2007_s22 = sld [smem:[#allocation21_spill]] (!%p1388_p1) }
  0x37   : > { %1420 = vmatprep.subr.mxu0 %v1619_v2  ;;  %s2004_s0 = scalar_lea.vmem %s2003_s13, %s1767_s17  ;;  %v1377_v27 = vld [vmem:[%s610_s18] ss:$0 sm:$0xff] }
  0x38   : > { %v624_v15 = vld [vmem:[%s2004_s0] sm:$0xff] }
  0x39   : > { %1418 = vmatmul.mubr.msk.f32.vlgmr.msra.gmra.mxu0 %vm633_vm1, %v623_v5  ;;  %s2006_s21 = scalar_lea.vmem %s2005_s11, %s1767_s17  ;;  %v1044_v34 = vld [vmem:[%s1816_s26] sm:$0xff] }
  0x3a   : > { %1422 = vmatprep.mubr.msk.f32.mxu0 %vm1620_vm2, %v1619_v2  ;;  %1421 = vmatpush3.xpose.msk.msra.mxu0 %vm633_vm1, %v794_v14  ;;  %v956_v16 = vld [vmem:[%s2006_s21] sm:$0xff] }
  0x3b   : > { %1430 = vmatprep.subr.mxu0 %v1619_v2  ;;  %vm957_vm4 = vcmp.eq.f32.partialorder %v956_v16, 0.0  ;;  %v1043_v40 = vld [vmem:[#allocation2] sm:$0xff] }
  0x3d   : > { %1423 = vmatmul.mubr.msk.f32.vlgmr.msra.gmra.mxu0 %vm633_vm1, %v624_v15 }
  0x3e   : > { %1432 = vmatprep.mubr.msk.f32.mxu0 %vm1620_vm2, %v1619_v2 }
  0xf5   : > { %v706_v6 = vpop.f32.mrf.mxu0 }
  0xf6   : > { %v707_v13 = vadd.f32 %v1371_v10, %v706_v6 }
  0xf7   : > { %v1414_v7 = vpop.f32.mrf.mxu0 }
  0xf9   : > { %v790_v9 = vpop.f32.mrf.mxu0 }
  0xfa   : > { %v791_v11 = vadd.f32 %v1374_v8, %v790_v9 }
  0xfb   : > { %v1419_v12 = vpop.f32.mrf.mxu0 }
  0xfc   : > { %1426 = vmatpush3.xpose.msk.msra.mxu1 %vm878_vm3, %v791_v11 }
  0xfd   : > { %1435 = vmatprep.subr.mxu1 %v1619_v2  ;;  %v874_v28 = vpop.f32.mrf.mxu0 }
  0xfe   : > { %v875_v29 = vadd.f32 %v1377_v27, %v874_v28 }
  0xff   : > { %1428 = vmatmul.mubr.msk.f32.vlgmr.msra.gmra.mxu1 %vm878_vm3, %v707_v13  ;;  %v1424_v30 = vpop.f32.mrf.mxu0 }
 0x100   : > { %1443 = vmatprep.mubr.msk.f32.mxu1 %vm1620_vm2, %v1619_v2  ;;  %1431 = vmatpush3.msra.mxu0 %v875_v29 }
 0x101   : > { %1436 = vmatpush3.xpose.msk.msra.mxu1 %vm878_vm3, %v1047_v31 }
 0x102   : > { %1437 = vmatprep.subr.mxu1 %v1619_v2 }
 0x105   : > { %1438 = vmatpush3.xpose.msk.msra.mxu1 %vm878_vm3, %v1046_v32 }
 0x106   : > { %1439 = vmatprep.subr.mxu1 %v1619_v2 }
 0x109   : > { %1440 = vmatpush3.xpose.msk.msra.mxu1 %vm878_vm3, %v1045_v33 }
 0x10a   : > { %1441 = vmatprep.subr.mxu1 %v1619_v2 }
 0x10d   : > { %1442 = vmatpush3.xpose.msk.msra.mxu1 %vm878_vm3, %v1044_v34 }
 0x1bf   : > { %v951_v17 = vpop.f32.mrf.mxu1 }
 0x1c0   : > { %v955_v18 = vmul.f32 0.35355338, %v951_v17 }
 0x1c1   : > { %v1429_v19 = vpop.f32.mrf.mxu1 }
 0x1c2   : > { %v958_v20 = vsel %vm957_vm4, -1e+09, %v955_v18 }
 0x1c3   : > { %v959_v21 = vsel %vm878_vm3, %v958_v20, -inf }
 0x1c4   : > { %960 = vmax.xlane.f32.xlu0 %v959_v21 }
 0x24d   : > { %v961_v22 = vpop.xlane.xlu0 %960 }
 0x24e   : > { %v962_v23 = vsub.f32 %v958_v20, %v961_v22 }
 0x250   : > { %v963_v24 = vmul.f32 1.442695, %v962_v23 }
 0x252   : > { %1520 = vpow2.f32 %v963_v24 }
 0x25f   : > { %v1521_v25 = vpop.eup %1520 }
 0x260   : > { %v965_v26 = vsel %vm878_vm3, %v1521_v25, 0.0 }
 0x261   : > { %966 = vadd.xlane.f32.xlu0 %v965_v26 }
 0x2ea   : > { %v967_v35 = vpop.xlane.xlu0 %966 }
 0x2eb   : > { %1522 = vrcp.f32 %v967_v35 }
 0x2f8   : > { %v1523_v36 = vpop.eup %1522 }
 0x2f9   : > { %v969_v37 = vmul.f32 %v1523_v36, %v1521_v25 }
 0x2fb   : > { %1433 = vmatmul.mubr.msk.f32.vlgmr.msra.gmra.mxu0 %vm878_vm3, %v969_v37 }
 0x3bb   : > { %v1039_v38 = vpop.f32.mrf.mxu0 }
 0x3bc   : > { %1444 = vmatmul.mubr.msk.f32.vlgmr.msra.gmra.mxu1 %vm878_vm3, %v1039_v38 }
 0x3bd   : > { %v1434_v39 = vpop.f32.mrf.mxu0 }
 0x47b   : > { %1138 = sbr.rel (%p1388_p1) target bundleno = 1162 (0x48a), region = 76 }
 0x47c   : > { %v1129_v41 = vpop.f32.mrf.mxu1 }
 0x47d   : > { %v1133_v42 = vadd.f32 %v1129_v41, %v1043_v40 }
 0x47e   : > { %v1445_v43 = vpop.f32.mrf.mxu1 }
 0x47f   : > { %1134 = vst.msk [vmem:[#allocation2] sm:$0xff] %vm633_vm1, %v1133_v42 }
 0x480   : > { %v1389_v45 = vld [vmem:[%s2007_s22] ss:$0 sm:$0xff] }
 0x486   : > { %v1139_v44 = vld [vmem:[#allocation2] sm:$0xff] }
 0x487   : > { %v1147_v46 = vadd.f32 %v1389_v45, %v1139_v44 }
 0x489   : > { %1148 = vst.msk [vmem:[%s567_s19] sm:$0xff] %vm633_vm1, %v1147_v46 }
 0x48a PF: > { %s2008_s26 = sld [smem:[#allocation9_spill]]  ;;  %s1164_s28 = sshll.u32 %s567_s19, 4  ;;  %s1165_s28 = int_to_ptr.vmem [resolvable:$true] %s1164_s28 }
 0x48b   : > { %s2009_s25 = sld [smem:[#allocation7_spill]]  ;;  %s1524_s2 = scalar_lea.vmem %s1165_s28, 128 }
 0x48c   : > { %s2011_s24 = sld [smem:[#allocation22_spill]]  ;;  %p1525_p2 = scmp.ne.s32.totalorder %s1165_s28, %s1524_s2 }
 0x48d   : > { %s1621_s3 = smov [#allocation3]  }
 0x48e   : > { %p1526_p4 = pnand %p1525_p2, %p1736_p3  ;;  %s1528_s11 = sshll.u32 %s1621_s3, 4  ;;  %s1529_s11 = int_to_ptr.vmem [resolvable:$false] %s1528_s11 }
 0x48f   : > { %s1530_s21 = scalar_lea.vmem %s1529_s11, 256  ;;  %p1531_p6 = scmp.lt.s32.totalorder %s1165_s28, %s1529_s11 }
 0x490   : > { %s1391_s30 = sshll.u32 %s2008_s26, 7  ;;  %p1527_p5 = pneg %p1526_p4 }
 0x491   : > { %s2013_s13 = sand.u32 1, %s2009_s25   ;;  %p1532_p7 = scmp.lt.s32.totalorder %s1530_s21, %s1524_s2 }
 0x492   : > { %s2012_s16 = smov %s2011_s24  ;;  %s1162_s12 = scalar_lea.hbm %s2011_s24, %s1391_s30 }
 0x493   : > { %s1150_s0 = scalar_lea.sflag [#allocation4], %s2013_s13  ;;  %p1533_p8 = por %p1532_p7, %p1531_p6 }
 0x495   : > { %p1534_p10 = pnand %p1533_p8, %p1527_p5 }
 0x497   : > { %1537 = shalt.err (!%p1534_p10)
}
 0x498   : > { %s1538_s15 = scalar_lea.hbm %s1162_s12, 128  ;;  %s1542_s17 = scalar_lea.hbm %s2012_s16, 256 }
 0x499   : > { %p1539_p11 = scmp.ne.s32.totalorder %s1162_s12, %s1538_s15  ;;  %p1543_p0 = scmp.lt.s32.totalorder %s1162_s12, %s2012_s16 }
 0x49a   : > { %p1544_p1 = scmp.lt.s32.totalorder %s1542_s17, %s1538_s15 }
 0x49b   : > { %p1540_p12 = pnand %p1539_p11, %p1736_p3 }
 0x49c   : > { %p1545_p2 = por %p1544_p1, %p1543_p0 }
 0x49d   : > { %p1541_p13 = pneg %p1540_p12 }
 0x49f   : > { %p1546_p4 = pnand %p1545_p2, %p1541_p13 }
 0x4a1   : > { %1549 = shalt.err (!%p1546_p4)
}
 0x4a2   : > { %1446 = dma.vmem_to_hbm [thread:$0]  (%p1736_p3), %s1165_s28, 128, %s1162_s12, %s1150_s0  }
 0x4a3 PF: > { %s2014_s22 = sld [smem:[#allocation12_spill]] }
 0x4a4   : > { %s2015_s26 = sld [smem:[#allocation6_spill]] }
 0x4a9   : > { %p1452_p5 = scmp.ge.s32.totalorder %s2014_s22, 2 }
 0x4aa   : > { %s1176_s30 = sand.u32 1, %s2015_s26  }
 0x4ab   : > { %p1449_p6 = pnand %p1452_p5, %p1746_p9  ;;  %s1177_s27 = scalar_lea.sflag [#allocation4], %s1176_s30 }
 0x4ad   : > { %p1450_p7 = pneg %p1449_p6 }
 0x4af   : > { %1583 = dma.done.wait (%p1450_p7), %s1177_s27, 128  }
 0x4b0   : > { %1585 = vsyncadd (%p1450_p7), %s1177_s27, 4294967168  ;;  %s25_s28 = sadd.s32 1, %s2014_s22   ;;  %s2017_s21 = sld [smem:[#allocation7_spill]] }
 0x4b1   : > { %p22_p8 = scmp.ge.s32.totalorder %s25_s28, 10   ;;  %s2018_s22 = sld [smem:[#allocation8_spill]] }
 0x4b2   : > { %s2019_s23 = sld [smem:[#allocation17_spill]] }
 0x4b3   : > { %s2020_s24 = sld [smem:[#allocation10_spill]]  ;;  %24 = sbr.rel (!%p22_p8) target bundleno = 11 (0xb), region = 141 }
 0x4b4   : > { %s2021_s25 = sld [smem:[#allocation11_spill]] }
 0x4b5   : > { %s2022_s26 = sld [smem:[#allocation13_spill]] }
 0x4b6   : > { %s2023_s27 = sld [smem:[#allocation15_spill]] }
 0x4b8   :  { %1182 = vsyncpa [#allocation4], 1 }
 0x4b9   :  { %1184 = vsyncpa [#allocation4 + $0x1], 1 }

</bundles_post_ra>
